<compile_context>
chip_gen: v7x
topology: tpu7x:2x2x1
jax: 0.10.0
libtpu: 0.0.40
codegen_flags: <defaults>
</compile_context>

<pallas_src>
import functools

import jax
import jax.numpy as jnp
from jax import lax
from jax.experimental import pallas as pl
from jax.experimental.pallas import tpu as pltpu

N_NEURONS = 10
IN_FEATURES = 2
OUT_FEATURES = 1

LANE = 128                   # TPU lane width
SUBLANE = 8                  # TPU sublane count
TILE_UNIT = LANE * SUBLANE   # batch padding granularity (1024 rows)


def _make_mlp_kernel(chunk_rows):
    """Kernel factory; chunk_rows is the static row-chunk of the (TBr,128) slab."""

    def mlp_kernel(x_ref, a1_ref, c1_ref, a2_ref, c2_ref, o_ref):
        # x_ref : (IN_FEATURES, TBr, 128) VMEM -- batch tile, batch on lane axis
        # o_ref : (TBr, 128)              VMEM -- lane- and sublane-dense output
        # a1/c1/a2/c2 : folded parameters in SMEM (resident, read as scalars)
        tbr = o_ref.shape[0]
        n_chunks = tbr // chunk_rows

        # Hoist all SMEM scalar reads out of the chunk loop.
        a1_0 = [a1_ref[0, j] for j in range(N_NEURONS)]
        a1_1 = [a1_ref[1, j] for j in range(N_NEURONS)]
        c1 = [c1_ref[0, j] for j in range(N_NEURONS)]
        a2 = [a2_ref[0, j] for j in range(N_NEURONS)]
        c2 = c2_ref[0, 0]

        def chunk_body(c, carry):
            r0 = pl.multiple_of(c * chunk_rows, chunk_rows)
            rows = pl.ds(r0, chunk_rows)
            x0 = x_ref[0, rows, :]                     # (chunk_rows, 128)
            x1 = x_ref[1, rows, :]                     # (chunk_rows, 128)
            acc = jnp.full_like(x0, c2)
            # Fully unrolled over the 10 hidden units: VPU FMAs + EUP tanh.
            for j in range(N_NEURONS):
                z = a1_0[j] * x0 + a1_1[j] * x1 + c1[j]
                acc = acc + a2[j] * jnp.tanh(z)
            o_ref[rows, :] = acc.astype(o_ref.dtype)
            return carry

        lax.fori_loop(0, n_chunks, chunk_body, 0, unroll=False)

    return mlp_kernel


@functools.partial(jax.jit, static_argnames=("block_batch",))
def mlp_forward(x, w1, b1, w2, b2, *, block_batch=131072):
    """x: (B, 2) f32; returns (B, 1) f32.

    Parameter layout (transposed vs. PyTorch nn.Linear storage, same math):
      w1: (2, 10)  b1: (1, 10)  w2: (1, 10) (== linear2.weight)  b2: (1, 1)
      y = sigmoid(x @ w1 + b1) @ w2.T + b2
    """
    B = x.shape[0]
    dtype = x.dtype

    # Batch tiling: multiples of 1024 rows, as large as block_batch allows,
    # but capped so the grid has >= 2 steps whenever the padded batch permits
    # (lets ("parallel",) shard across the 2 TensorCores on v7x).
    n_units = pl.cdiv(B, TILE_UNIT)
    block_units = max(1, block_batch // TILE_UNIT)
    units_per_tile = max(1, min(block_units, pl.cdiv(n_units, 2)))
    TB = units_per_tile * TILE_UNIT
    Bp = pl.cdiv(B, TB) * TB            # padded batch
    TBr = TB // LANE                    # sublane rows per batch tile (mult of 8)

    # Largest chunk <= 64 rows that divides TBr (TBr is always a multiple of 8).
    chunk_rows = SUBLANE
    for cand in (64, 32, 16):
        if TBr % cand == 0:
            chunk_rows = cand
            break

    # Fold the tanh-form sigmoid constants into the SMEM-resident parameters:
    #   sigmoid(z) = 0.5 + 0.5*tanh(0.5*z)
    #   y = sum_j 0.5*w2[j]*tanh(0.5*(w1[:,j].x + b1[j])) + (b2 + 0.5*sum(w2))
    a1 = (0.5 * w1).astype(jnp.float32)                                   # (2, 10)
    c1 = (0.5 * b1).astype(jnp.float32)                                   # (1, 10)
    a2 = (0.5 * w2).astype(jnp.float32)                                   # (1, 10)
    c2 = (b2 + 0.5 * jnp.sum(w2, axis=-1, keepdims=True)).astype(jnp.float32)  # (1, 1)

    # Layout plumbing (fused under jit): pad batch, put batch on the lane axis,
    # fold into dense (Bp/128, 128) slabs.
    x_t = jnp.pad(x, ((0, Bp - B), (0, 0))).T                             # (2, Bp)
    x_t = x_t.reshape(IN_FEATURES, Bp // LANE, LANE)                      # (2, Bp/128, 128)

    grid = (Bp // TB,)

    out = pl.pallas_call(
        _make_mlp_kernel(chunk_rows),
        out_shape=jax.ShapeDtypeStruct((Bp // LANE, LANE), dtype),
        grid=grid,
        in_specs=[
            # Streaming input: only x is tiled over the batch grid.
            pl.BlockSpec((IN_FEATURES, TBr, LANE), lambda i: (0, i, 0)),
            # Resident folded parameters in SMEM (no per-step re-streaming).
            pl.BlockSpec(memory_space=pltpu.MemorySpace.SMEM),   # a1 (2, 10)
            pl.BlockSpec(memory_space=pltpu.MemorySpace.SMEM),   # c1 (1, 10)
            pl.BlockSpec(memory_space=pltpu.MemorySpace.SMEM),   # a2 (1, 10)
            pl.BlockSpec(memory_space=pltpu.MemorySpace.SMEM),   # c2 (1, 1)
        ],
        out_specs=pl.BlockSpec((TBr, LANE), lambda i: (i, 0)),
        compiler_params=pltpu.CompilerParams(
            dimension_semantics=("parallel",),   # megacore-shardable on v7x
        ),
    )(x_t, a1, c1, a2, c2)

    # Back to the PyTorch layout (B, 1).
    return out.reshape(Bp, OUT_FEATURES)[:B]


def init_params(key):
    """Deterministic init matching PyTorch nn.Linear default:
    U(-1/sqrt(fan_in), 1/sqrt(fan_in)) for both weights and biases."""
    k1, k2, k3, k4 = jax.random.split(key, 4)
    bound1 = 1.0 / jnp.sqrt(IN_FEATURES)
    bound2 = 1.0 / jnp.sqrt(N_NEURONS)
    w1 = jax.random.uniform(k1, (IN_FEATURES, N_NEURONS), jnp.float32, -bound1, bound1)
    b1 = jax.random.uniform(k2, (1, N_NEURONS), jnp.float32, -bound1, bound1)
    # w2 stored as (1, N_NEURONS) == PyTorch linear2.weight layout.
    w2 = jax.random.uniform(k3, (1, N_NEURONS), jnp.float32, -bound2, bound2)
    b2 = jax.random.uniform(k4, (1, 1), jnp.float32, -bound2, bound2)
    return w1, b1, w2, b2


def mlp_reference(x, w1, b1, w2, b2):
    h = jax.nn.sigmoid(x @ w1 + b1)
    return h @ w2.T + b2


if __name__ == "__main__":
    key = jax.random.PRNGKey(0)
    kx, kp, kx2 = jax.random.split(key, 3)

    w1, b1, w2, b2 = init_params(kp)

    # Small test (single-tile grid).
    batch = 8
    x = jax.random.normal(kx, (batch, IN_FEATURES), dtype=jnp.float32)
    out = jax.block_until_ready(mlp_forward(x, w1, b1, w2, b2))
    ref = mlp_reference(x, w1, b1, w2, b2)
    assert out.shape == (batch, OUT_FEATURES), out.shape
    assert jnp.allclose(out, ref, atol=1e-5, rtol=1e-5), (out, ref)

    # Multi-step grid + padding + megacore path (B not a multiple of 1024).
    batch2 = 2500
    x2 = jax.random.normal(kx2, (batch2, IN_FEATURES), dtype=jnp.float32)
    out2 = jax.block_until_ready(mlp_forward(x2, w1, b1, w2, b2, block_batch=2048))
    ref2 = mlp_reference(x2, w1, b1, w2, b2)
    assert out2.shape == (batch2, OUT_FEATURES), out2.shape
    assert jnp.allclose(out2, ref2, atol=1e-5, rtol=1e-5)

    print("KERNEL_OK")
</pallas_src>

<mosaic_0001>
module attributes {stable_mosaic.version = 11 : i64} {
  func.func @mlp_kernel(%arg0: i32, %arg1: memref<2x8x128xf32, #tpu.memory_space<vmem>>, %arg2: memref<2x10xf32, #tpu.memory_space<smem>>, %arg3: memref<1x10xf32, #tpu.memory_space<smem>>, %arg4: memref<1x10xf32, #tpu.memory_space<smem>>, %arg5: memref<1x1xf32, #tpu.memory_space<smem>>, %arg6: memref<8x128xf32, #tpu.memory_space<vmem>>) attributes {dimension_semantics = [#tpu.dimension_semantics<parallel>], iteration_bounds = array<i64: 1>, scalar_prefetch = 0 : i64, scratch_operands = 0 : i64, tpu.core_type = #tpu.core_type<tc>, window_params = [{transform_indices = @transform_0, window_bounds = array<i64: 2, 8, 128>}, {transform_indices = @transform_1, window_bounds = array<i64: 2, 10>}, {transform_indices = @transform_2, window_bounds = array<i64: 1, 10>}, {transform_indices = @transform_3, window_bounds = array<i64: 1, 10>}, {transform_indices = @transform_4, window_bounds = array<i64: 1, 1>}, {transform_indices = @transform_5, window_bounds = array<i64: 8, 128>}]} {
    %c0 = arith.constant 0 : index
    %c0_0 = arith.constant 0 : index
    %0 = memref.load %arg2[%c0, %c0_0] : memref<2x10xf32, #tpu.memory_space<smem>>
    %c0_1 = arith.constant 0 : index
    %c1 = arith.constant 1 : index
    %1 = memref.load %arg2[%c0_1, %c1] : memref<2x10xf32, #tpu.memory_space<smem>>
    %c0_2 = arith.constant 0 : index
    %c2 = arith.constant 2 : index
    %2 = memref.load %arg2[%c0_2, %c2] : memref<2x10xf32, #tpu.memory_space<smem>>
    %c0_3 = arith.constant 0 : index
    %c3 = arith.constant 3 : index
    %3 = memref.load %arg2[%c0_3, %c3] : memref<2x10xf32, #tpu.memory_space<smem>>
    %c0_4 = arith.constant 0 : index
    %c4 = arith.constant 4 : index
    %4 = memref.load %arg2[%c0_4, %c4] : memref<2x10xf32, #tpu.memory_space<smem>>
    %c0_5 = arith.constant 0 : index
    %c5 = arith.constant 5 : index
    %5 = memref.load %arg2[%c0_5, %c5] : memref<2x10xf32, #tpu.memory_space<smem>>
    %c0_6 = arith.constant 0 : index
    %c6 = arith.constant 6 : index
    %6 = memref.load %arg2[%c0_6, %c6] : memref<2x10xf32, #tpu.memory_space<smem>>
    %c0_7 = arith.constant 0 : index
    %c7 = arith.constant 7 : index
    %7 = memref.load %arg2[%c0_7, %c7] : memref<2x10xf32, #tpu.memory_space<smem>>
    %c0_8 = arith.constant 0 : index
    %c8 = arith.constant 8 : index
    %8 = memref.load %arg2[%c0_8, %c8] : memref<2x10xf32, #tpu.memory_space<smem>>
    %c0_9 = arith.constant 0 : index
    %c9 = arith.constant 9 : index
    %9 = memref.load %arg2[%c0_9, %c9] : memref<2x10xf32, #tpu.memory_space<smem>>
    %c1_10 = arith.constant 1 : index
    %c0_11 = arith.constant 0 : index
    %10 = memref.load %arg2[%c1_10, %c0_11] : memref<2x10xf32, #tpu.memory_space<smem>>
    %c1_12 = arith.constant 1 : index
    %c1_13 = arith.constant 1 : index
    %11 = memref.load %arg2[%c1_12, %c1_13] : memref<2x10xf32, #tpu.memory_space<smem>>
    %c1_14 = arith.constant 1 : index
    %c2_15 = arith.constant 2 : index
    %12 = memref.load %arg2[%c1_14, %c2_15] : memref<2x10xf32, #tpu.memory_space<smem>>
    %c1_16 = arith.constant 1 : index
    %c3_17 = arith.constant 3 : index
    %13 = memref.load %arg2[%c1_16, %c3_17] : memref<2x10xf32, #tpu.memory_space<smem>>
    %c1_18 = arith.constant 1 : index
    %c4_19 = arith.constant 4 : index
    %14 = memref.load %arg2[%c1_18, %c4_19] : memref<2x10xf32, #tpu.memory_space<smem>>
    %c1_20 = arith.constant 1 : index
    %c5_21 = arith.constant 5 : index
    %15 = memref.load %arg2[%c1_20, %c5_21] : memref<2x10xf32, #tpu.memory_space<smem>>
    %c1_22 = arith.constant 1 : index
    %c6_23 = arith.constant 6 : index
    %16 = memref.load %arg2[%c1_22, %c6_23] : memref<2x10xf32, #tpu.memory_space<smem>>
    %c1_24 = arith.constant 1 : index
    %c7_25 = arith.constant 7 : index
    %17 = memref.load %arg2[%c1_24, %c7_25] : memref<2x10xf32, #tpu.memory_space<smem>>
    %c1_26 = arith.constant 1 : index
    %c8_27 = arith.constant 8 : index
    %18 = memref.load %arg2[%c1_26, %c8_27] : memref<2x10xf32, #tpu.memory_space<smem>>
    %c1_28 = arith.constant 1 : index
    %c9_29 = arith.constant 9 : index
    %19 = memref.load %arg2[%c1_28, %c9_29] : memref<2x10xf32, #tpu.memory_space<smem>>
    %c0_30 = arith.constant 0 : index
    %c0_31 = arith.constant 0 : index
    %20 = memref.load %arg3[%c0_30, %c0_31] : memref<1x10xf32, #tpu.memory_space<smem>>
    %c0_32 = arith.constant 0 : index
    %c1_33 = arith.constant 1 : index
    %21 = memref.load %arg3[%c0_32, %c1_33] : memref<1x10xf32, #tpu.memory_space<smem>>
    %c0_34 = arith.constant 0 : index
    %c2_35 = arith.constant 2 : index
    %22 = memref.load %arg3[%c0_34, %c2_35] : memref<1x10xf32, #tpu.memory_space<smem>>
    %c0_36 = arith.constant 0 : index
    %c3_37 = arith.constant 3 : index
    %23 = memref.load %arg3[%c0_36, %c3_37] : memref<1x10xf32, #tpu.memory_space<smem>>
    %c0_38 = arith.constant 0 : index
    %c4_39 = arith.constant 4 : index
    %24 = memref.load %arg3[%c0_38, %c4_39] : memref<1x10xf32, #tpu.memory_space<smem>>
    %c0_40 = arith.constant 0 : index
    %c5_41 = arith.constant 5 : index
    %25 = memref.load %arg3[%c0_40, %c5_41] : memref<1x10xf32, #tpu.memory_space<smem>>
    %c0_42 = arith.constant 0 : index
    %c6_43 = arith.constant 6 : index
    %26 = memref.load %arg3[%c0_42, %c6_43] : memref<1x10xf32, #tpu.memory_space<smem>>
    %c0_44 = arith.constant 0 : index
    %c7_45 = arith.constant 7 : index
    %27 = memref.load %arg3[%c0_44, %c7_45] : memref<1x10xf32, #tpu.memory_space<smem>>
    %c0_46 = arith.constant 0 : index
    %c8_47 = arith.constant 8 : index
    %28 = memref.load %arg3[%c0_46, %c8_47] : memref<1x10xf32, #tpu.memory_space<smem>>
    %c0_48 = arith.constant 0 : index
    %c9_49 = arith.constant 9 : index
    %29 = memref.load %arg3[%c0_48, %c9_49] : memref<1x10xf32, #tpu.memory_space<smem>>
    %c0_50 = arith.constant 0 : index
    %c0_51 = arith.constant 0 : index
    %30 = memref.load %arg4[%c0_50, %c0_51] : memref<1x10xf32, #tpu.memory_space<smem>>
    %c0_52 = arith.constant 0 : index
    %c1_53 = arith.constant 1 : index
    %31 = memref.load %arg4[%c0_52, %c1_53] : memref<1x10xf32, #tpu.memory_space<smem>>
    %c0_54 = arith.constant 0 : index
    %c2_55 = arith.constant 2 : index
    %32 = memref.load %arg4[%c0_54, %c2_55] : memref<1x10xf32, #tpu.memory_space<smem>>
    %c0_56 = arith.constant 0 : index
    %c3_57 = arith.constant 3 : index
    %33 = memref.load %arg4[%c0_56, %c3_57] : memref<1x10xf32, #tpu.memory_space<smem>>
    %c0_58 = arith.constant 0 : index
    %c4_59 = arith.constant 4 : index
    %34 = memref.load %arg4[%c0_58, %c4_59] : memref<1x10xf32, #tpu.memory_space<smem>>
    %c0_60 = arith.constant 0 : index
    %c5_61 = arith.constant 5 : index
    %35 = memref.load %arg4[%c0_60, %c5_61] : memref<1x10xf32, #tpu.memory_space<smem>>
    %c0_62 = arith.constant 0 : index
    %c6_63 = arith.constant 6 : index
    %36 = memref.load %arg4[%c0_62, %c6_63] : memref<1x10xf32, #tpu.memory_space<smem>>
    %c0_64 = arith.constant 0 : index
    %c7_65 = arith.constant 7 : index
    %37 = memref.load %arg4[%c0_64, %c7_65] : memref<1x10xf32, #tpu.memory_space<smem>>
    %c0_66 = arith.constant 0 : index
    %c8_67 = arith.constant 8 : index
    %38 = memref.load %arg4[%c0_66, %c8_67] : memref<1x10xf32, #tpu.memory_space<smem>>
    %c0_68 = arith.constant 0 : index
    %c9_69 = arith.constant 9 : index
    %39 = memref.load %arg4[%c0_68, %c9_69] : memref<1x10xf32, #tpu.memory_space<smem>>
    %c0_70 = arith.constant 0 : index
    %c0_71 = arith.constant 0 : index
    %40 = memref.load %arg5[%c0_70, %c0_71] : memref<1x1xf32, #tpu.memory_space<smem>>
    %c0_i32 = arith.constant 0 : i32
    %c8_i32 = arith.constant 8 : i32
    %41 = arith.muli %c0_i32, %c8_i32 : i32
    %42 = tpu.assume_multiple %41, 8 : i32
    %c0_72 = arith.constant 0 : index
    %43 = arith.index_cast %42 : i32 to index
    %c0_73 = arith.constant 0 : index
    %44 = vector.load %arg1[%c0_72, %43, %c0_73] : memref<2x8x128xf32, #tpu.memory_space<vmem>>, vector<1x8x128xf32>
    %45 = vector.shape_cast %44 : vector<1x8x128xf32> to vector<8x128xf32>
    %c1_74 = arith.constant 1 : index
    %46 = arith.index_cast %42 : i32 to index
    %c0_75 = arith.constant 0 : index
    %47 = vector.load %arg1[%c1_74, %46, %c0_75] : memref<2x8x128xf32, #tpu.memory_space<vmem>>, vector<1x8x128xf32>
    %48 = vector.shape_cast %47 : vector<1x8x128xf32> to vector<8x128xf32>
    %49 = vector.broadcast %40 : f32 to vector<8x128xf32>
    %50 = vector.broadcast %0 : f32 to vector<8x128xf32>
    %51 = arith.mulf %50, %45 : vector<8x128xf32>
    %52 = vector.broadcast %10 : f32 to vector<8x128xf32>
    %53 = arith.mulf %52, %48 : vector<8x128xf32>
    %54 = arith.addf %51, %53 : vector<8x128xf32>
    %55 = vector.broadcast %20 : f32 to vector<8x128xf32>
    %56 = arith.addf %54, %55 : vector<8x128xf32>
    %57 = math.tanh %56 : vector<8x128xf32>
    %58 = vector.broadcast %30 : f32 to vector<8x128xf32>
    %59 = arith.mulf %58, %57 : vector<8x128xf32>
    %60 = arith.addf %49, %59 : vector<8x128xf32>
    %61 = vector.broadcast %1 : f32 to vector<8x128xf32>
    %62 = arith.mulf %61, %45 : vector<8x128xf32>
    %63 = vector.broadcast %11 : f32 to vector<8x128xf32>
    %64 = arith.mulf %63, %48 : vector<8x128xf32>
    %65 = arith.addf %62, %64 : vector<8x128xf32>
    %66 = vector.broadcast %21 : f32 to vector<8x128xf32>
    %67 = arith.addf %65, %66 : vector<8x128xf32>
    %68 = math.tanh %67 : vector<8x128xf32>
    %69 = vector.broadcast %31 : f32 to vector<8x128xf32>
    %70 = arith.mulf %69, %68 : vector<8x128xf32>
    %71 = arith.addf %60, %70 : vector<8x128xf32>
    %72 = vector.broadcast %2 : f32 to vector<8x128xf32>
    %73 = arith.mulf %72, %45 : vector<8x128xf32>
    %74 = vector.broadcast %12 : f32 to vector<8x128xf32>
    %75 = arith.mulf %74, %48 : vector<8x128xf32>
    %76 = arith.addf %73, %75 : vector<8x128xf32>
    %77 = vector.broadcast %22 : f32 to vector<8x128xf32>
    %78 = arith.addf %76, %77 : vector<8x128xf32>
    %79 = math.tanh %78 : vector<8x128xf32>
    %80 = vector.broadcast %32 : f32 to vector<8x128xf32>
    %81 = arith.mulf %80, %79 : vector<8x128xf32>
    %82 = arith.addf %71, %81 : vector<8x128xf32>
    %83 = vector.broadcast %3 : f32 to vector<8x128xf32>
    %84 = arith.mulf %83, %45 : vector<8x128xf32>
    %85 = vector.broadcast %13 : f32 to vector<8x128xf32>
    %86 = arith.mulf %85, %48 : vector<8x128xf32>
    %87 = arith.addf %84, %86 : vector<8x128xf32>
    %88 = vector.broadcast %23 : f32 to vector<8x128xf32>
    %89 = arith.addf %87, %88 : vector<8x128xf32>
    %90 = math.tanh %89 : vector<8x128xf32>
    %91 = vector.broadcast %33 : f32 to vector<8x128xf32>
    %92 = arith.mulf %91, %90 : vector<8x128xf32>
    %93 = arith.addf %82, %92 : vector<8x128xf32>
    %94 = vector.broadcast %4 : f32 to vector<8x128xf32>
    %95 = arith.mulf %94, %45 : vector<8x128xf32>
    %96 = vector.broadcast %14 : f32 to vector<8x128xf32>
    %97 = arith.mulf %96, %48 : vector<8x128xf32>
    %98 = arith.addf %95, %97 : vector<8x128xf32>
    %99 = vector.broadcast %24 : f32 to vector<8x128xf32>
    %100 = arith.addf %98, %99 : vector<8x128xf32>
    %101 = math.tanh %100 : vector<8x128xf32>
    %102 = vector.broadcast %34 : f32 to vector<8x128xf32>
    %103 = arith.mulf %102, %101 : vector<8x128xf32>
    %104 = arith.addf %93, %103 : vector<8x128xf32>
    %105 = vector.broadcast %5 : f32 to vector<8x128xf32>
    %106 = arith.mulf %105, %45 : vector<8x128xf32>
    %107 = vector.broadcast %15 : f32 to vector<8x128xf32>
    %108 = arith.mulf %107, %48 : vector<8x128xf32>
    %109 = arith.addf %106, %108 : vector<8x128xf32>
    %110 = vector.broadcast %25 : f32 to vector<8x128xf32>
    %111 = arith.addf %109, %110 : vector<8x128xf32>
    %112 = math.tanh %111 : vector<8x128xf32>
    %113 = vector.broadcast %35 : f32 to vector<8x128xf32>
    %114 = arith.mulf %113, %112 : vector<8x128xf32>
    %115 = arith.addf %104, %114 : vector<8x128xf32>
    %116 = vector.broadcast %6 : f32 to vector<8x128xf32>
    %117 = arith.mulf %116, %45 : vector<8x128xf32>
    %118 = vector.broadcast %16 : f32 to vector<8x128xf32>
    %119 = arith.mulf %118, %48 : vector<8x128xf32>
    %120 = arith.addf %117, %119 : vector<8x128xf32>
    %121 = vector.broadcast %26 : f32 to vector<8x128xf32>
    %122 = arith.addf %120, %121 : vector<8x128xf32>
    %123 = math.tanh %122 : vector<8x128xf32>
    %124 = vector.broadcast %36 : f32 to vector<8x128xf32>
    %125 = arith.mulf %124, %123 : vector<8x128xf32>
    %126 = arith.addf %115, %125 : vector<8x128xf32>
    %127 = vector.broadcast %7 : f32 to vector<8x128xf32>
    %128 = arith.mulf %127, %45 : vector<8x128xf32>
    %129 = vector.broadcast %17 : f32 to vector<8x128xf32>
    %130 = arith.mulf %129, %48 : vector<8x128xf32>
    %131 = arith.addf %128, %130 : vector<8x128xf32>
    %132 = vector.broadcast %27 : f32 to vector<8x128xf32>
    %133 = arith.addf %131, %132 : vector<8x128xf32>
    %134 = math.tanh %133 : vector<8x128xf32>
    %135 = vector.broadcast %37 : f32 to vector<8x128xf32>
    %136 = arith.mulf %135, %134 : vector<8x128xf32>
    %137 = arith.addf %126, %136 : vector<8x128xf32>
    %138 = vector.broadcast %8 : f32 to vector<8x128xf32>
    %139 = arith.mulf %138, %45 : vector<8x128xf32>
    %140 = vector.broadcast %18 : f32 to vector<8x128xf32>
    %141 = arith.mulf %140, %48 : vector<8x128xf32>
    %142 = arith.addf %139, %141 : vector<8x128xf32>
    %143 = vector.broadcast %28 : f32 to vector<8x128xf32>
    %144 = arith.addf %142, %143 : vector<8x128xf32>
    %145 = math.tanh %144 : vector<8x128xf32>
    %146 = vector.broadcast %38 : f32 to vector<8x128xf32>
    %147 = arith.mulf %146, %145 : vector<8x128xf32>
    %148 = arith.addf %137, %147 : vector<8x128xf32>
    %149 = vector.broadcast %9 : f32 to vector<8x128xf32>
    %150 = arith.mulf %149, %45 : vector<8x128xf32>
    %151 = vector.broadcast %19 : f32 to vector<8x128xf32>
    %152 = arith.mulf %151, %48 : vector<8x128xf32>
    %153 = arith.addf %150, %152 : vector<8x128xf32>
    %154 = vector.broadcast %29 : f32 to vector<8x128xf32>
    %155 = arith.addf %153, %154 : vector<8x128xf32>
    %156 = math.tanh %155 : vector<8x128xf32>
    %157 = vector.broadcast %39 : f32 to vector<8x128xf32>
    %158 = arith.mulf %157, %156 : vector<8x128xf32>
    %159 = arith.addf %148, %158 : vector<8x128xf32>
    %160 = arith.index_cast %42 : i32 to index
    %c0_76 = arith.constant 0 : index
    %161 = vector.load %arg6[%160, %c0_76] : memref<8x128xf32, #tpu.memory_space<vmem>>, vector<8x128xf32>
    tpu.vector_store %arg6[%160, %c0_76], %159 {strides = array<i32>} : memref<8x128xf32, #tpu.memory_space<vmem>>, vector<8x128xf32>,
    %c1_i32 = arith.constant 1 : i32
    return
  }
  func.func @transform_0(%arg0: i32) -> (i32, i32, i32) {
    %c0_i32 = arith.constant 0 : i32
    %c0_i32_0 = arith.constant 0 : i32
    %c0_i32_1 = arith.constant 0 : i32
    return %c0_i32, %arg0, %c0_i32_0 : i32, i32, i32
  }
  func.func @transform_1(%arg0: i32) -> (i32, i32) {
    %c0_i32 = arith.constant 0 : i32
    %c0_i32_0 = arith.constant 0 : i32
    %c0_i32_1 = arith.constant 0 : i32
    return %c0_i32, %c0_i32_0 : i32, i32
  }
  func.func @transform_2(%arg0: i32) -> (i32, i32) {
    %c0_i32 = arith.constant 0 : i32
    %c0_i32_0 = arith.constant 0 : i32
    %c0_i32_1 = arith.constant 0 : i32
    return %c0_i32, %c0_i32_0 : i32, i32
  }
  func.func @transform_3(%arg0: i32) -> (i32, i32) {
    %c0_i32 = arith.constant 0 : i32
    %c0_i32_0 = arith.constant 0 : i32
    %c0_i32_1 = arith.constant 0 : i32
    return %c0_i32, %c0_i32_0 : i32, i32
  }
  func.func @transform_4(%arg0: i32) -> (i32, i32) {
    %c0_i32 = arith.constant 0 : i32
    %c0_i32_0 = arith.constant 0 : i32
    %c0_i32_1 = arith.constant 0 : i32
    return %c0_i32, %c0_i32_0 : i32, i32
  }
  func.func @transform_5(%arg0: i32) -> (i32, i32) {
    %c0_i32 = arith.constant 0 : i32
    %c0_i32_0 = arith.constant 0 : i32
    return %arg0, %c0_i32 : i32, i32
  }
}

</mosaic_0001>

<bundles_post_ra>
// kernel: mlp_forward.1
= control target key start
LH: loop header
LB: loop body
LE: loop exit
PB: predicated region body
PF: predicated region fallthrough
CT: control target
= control target key end

     0   :  { %11 = vsyncpa [#allocation4], 0  ;;  %s493_s0 = inlined_call_operand.vmem [shape: f32[2,8,128], index: 0, kind: input, shape index: {}]   ;;  %s494_s1 = inlined_call_operand.vmem [shape: f32[2,10], index: 1, kind: input, shape index: {}]   ;;  %s495_s2 = inlined_call_operand.vmem [shape: f32[1,10], index: 2, kind: input, shape index: {}]   ;;  %s496_s3 = inlined_call_operand.vmem [shape: f32[1,10], index: 3, kind: input, shape index: {}]   ;;  %s497_s4 = inlined_call_operand.<no memory space> [shape: f32[1,1], index: 4, kind: input, shape index: {}]   ;;  %s498_s5 = inlined_call_operand.vmem [shape: f32[8,128], index: 5, kind: output, shape index: {}]  }
   0x1   :  { %12 = vsyncpa [#allocation6], 0  ;;  %s31_s20 = sshll.u32 %s495_s2, 4  ;;  %s21_s23 = sshll.u32 %s494_s1, 4  ;;  %s32_s20 = int_to_ptr.vmem [resolvable:$true] %s31_s20  ;;  %s22_s23 = int_to_ptr.vmem [resolvable:$true] %s21_s23 }
   0x2   :  { %s282_s24 = scalar_lea.vmem %s32_s20, 16  ;;  %p287_p1 = scmp.lt.s32.totalorder %s32_s20, %s32_s20 }
   0x3   :  { %p283_p0 = scmp.ne.s32.totalorder %s32_s20, %s282_s24  ;;  %p288_p2 = scmp.lt.s32.totalorder %s282_s24, %s282_s24 }
   0x5   :  { %p289_p3 = por %p288_p2, %p287_p1 }
   0x7   :  { %p290_p4 = pnand %p289_p3, %p283_p0 }
   0x9   :  { %293 = shalt.err (!%p290_p4)
}
   0xa   :  { %s322_s25 = smov [#allocation5]   ;;  %s294_s26 = scalar_lea.vmem %s22_s23, 32 }
   0xb   :  { %34 = dma.vmem_to_smem %s32_s20, 16, %s322_s25, [#allocation6]  }
   0xc   :  { %p295_p5 = scmp.ne.s32.totalorder %s22_s23, %s294_s26  ;;  %p299_p6 = scmp.lt.s32.totalorder %s22_s23, %s22_s23 }
   0xd   :  { %p300_p7 = scmp.lt.s32.totalorder %s294_s26, %s294_s26 }
   0xf   :  { %p301_p8 = por %p300_p7, %p299_p6 }
  0x11   :  { %p302_p9 = pnand %p301_p8, %p295_p5 }
  0x13   :  { %305 = shalt.err (!%p302_p9)
}
  0x14   :  { %s323_s2 = smov [#allocation3]   ;;  %s41_s28 = sshll.u32 %s496_s3, 4  ;;  %s42_s28 = int_to_ptr.vmem [resolvable:$true] %s41_s28 }
  0x15   :  { %24 = dma.vmem_to_smem %s22_s23, 32, %s323_s2, [#allocation4]  }
  0x16   :  { %s306_s29 = scalar_lea.vmem %s42_s28, 16  ;;  %p311_p11 = scmp.lt.s32.totalorder %s42_s28, %s42_s28 }
  0x17   :  { %p307_p10 = scmp.ne.s32.totalorder %s42_s28, %s306_s29  ;;  %p312_p12 = scmp.lt.s32.totalorder %s306_s29, %s306_s29 }
  0x19   :  { %p313_p13 = por %p312_p12, %p311_p11 }
  0x1b   :  { %p314_p0 = pnand %p313_p13, %p307_p10 }
  0x1d   :  { %317 = shalt.err (!%p314_p0)
}
  0x1e   :  { %s324_s30 = smov [#allocation7]  }
  0x1f   :  { %44 = dma.vmem_to_smem %s42_s28, 16, %s324_s30, [#allocation6]  }
  0x20   :  { %318 = dma.done.wait [#allocation4], 32  }
  0x21   :  { %319 = vsyncadd [#allocation4], 4294967264 }
  0x22   :  { %320 = dma.done.wait [#allocation6], 32  }
  0x23   :  { %321 = vsyncadd [#allocation6], 4294967264 }
  0x24   :  { %56 = sfence }
  0x25   :  { %s57_s6 = sld [smem:[#allocation3]]  ;;  %s221_s7 = sld [smem:[#allocation3 + $0x1]]  ;;  %v379_v0 = vld [vmem:[%s493_s0] sm:$0xff]  ;;  %v392_v7 = vld [vmem:[%s493_s0 + $0x8] sm:$0xff] }
  0x26   :  { %s222_s8 = sld [smem:[#allocation3 + $0x2]]  ;;  %s223_s9 = sld [smem:[#allocation3 + $0x3]] }
  0x27   :  { %s224_s3 = sld [smem:[#allocation3 + $0x4]]  ;;  %s225_s10 = sld [smem:[#allocation3 + $0x5]] }
  0x28   :  { %s364_s11 = sld [smem:[#allocation3 + $0x6]]  ;;  %s366_s12 = sld [smem:[#allocation3 + $0x7]] }
  0x29   :  { %s368_s13 = sld [smem:[#allocation3 + $0x80]]  ;;  %s370_s14 = sld [smem:[#allocation3 + $0x81]] }
  0x2a   :  { %s372_s15 = sld [smem:[#allocation3 + $0x82]]  ;;  %s374_s16 = sld [smem:[#allocation3 + $0x83]] }
  0x2b   :  { %v103_v1 = vstv %s57_s6  ;;  %v114_v2 = vstv %s221_s7  ;;  %s381_s19 = sld [smem:[#allocation3 + $0x84]]  ;;  %s383_s20 = sld [smem:[#allocation3 + $0x85]] }
  0x2c   :  { %v125_v3 = vstv %s222_s8  ;;  %v136_v4 = vstv %s223_s9  ;;  %s385_s21 = sld [smem:[#allocation3 + $0x86]]  ;;  %s387_s22 = sld [smem:[#allocation3 + $0x87]]  ;;  %v104_v8 = vmul.f32 %v103_v1, %v379_v0  ;;  %v115_v9 = vmul.f32 %v114_v2, %v379_v0 }
  0x2d   :  { %v147_v5 = vstv %s224_s3  ;;  %v158_v6 = vstv %s225_s10  ;;  %s398_s25 = sld [smem:[#allocation5]]  ;;  %s400_s26 = sld [smem:[#allocation5 + $0x1]]  ;;  %v126_v12 = vmul.f32 %v125_v3, %v379_v0  ;;  %v137_v13 = vmul.f32 %v136_v4, %v379_v0 }
  0x2e   :  { %v169_v10 = vstv %s364_s11  ;;  %v180_v11 = vstv %s366_s12  ;;  %v148_v14 = vmul.f32 %v147_v5, %v379_v0  ;;  %v159_v15 = vmul.f32 %v158_v6, %v379_v0  ;;  %s406_s0 = sld [smem:[#allocation5 + $0x2]]  ;;  %s408_s2 = sld [smem:[#allocation5 + $0x3]] }
  0x2f   :  { %v105_v16 = vstv %s368_s13  ;;  %v116_v17 = vstv %s370_s14  ;;  %v170_v18 = vmul.f32 %v169_v10, %v379_v0  ;;  %v181_v19 = vmul.f32 %v180_v11, %v379_v0  ;;  %s414_s1 = sld [smem:[#allocation5 + $0x4]]  ;;  %s416_s27 = sld [smem:[#allocation5 + $0x5]] }
  0x30   :  { %v106_v20 = vmul.f32 %v392_v7, %v105_v16  ;;  %v117_v21 = vmul.f32 %v392_v7, %v116_v17  ;;  %v127_v22 = vstv %s372_s15  ;;  %v138_v23 = vstv %s374_s16  ;;  %s422_s28 = sld [smem:[#allocation3 + $0x8]]  ;;  %s424_s29 = sld [smem:[#allocation5 + $0x6]] }
  0x31   :  { %v128_v24 = vmul.f32 %v392_v7, %v127_v22  ;;  %v139_v25 = vmul.f32 %v392_v7, %v138_v23  ;;  %v149_v26 = vstv %s381_s19  ;;  %v160_v27 = vstv %s383_s20  ;;  %s430_s30 = sld [smem:[#allocation3 + $0x9]]  ;;  %s432_s6 = sld [smem:[#allocation5 + $0x7]] }
  0x32   :  { %v107_v28 = vadd.f32 %v106_v20, %v104_v8  ;;  %v118_v29 = vadd.f32 %v117_v21, %v115_v9  ;;  %v150_v30 = vmul.f32 %v392_v7, %v149_v26  ;;  %v161_v31 = vmul.f32 %v392_v7, %v160_v27  ;;  %s440_s7 = sld [smem:[#allocation3 + $0x88]]  ;;  %s444_s8 = sld [smem:[#allocation3 + $0x89]] }
  0x33   :  { %v129_v32 = vadd.f32 %v128_v24, %v126_v12  ;;  %v140_v33 = vadd.f32 %v139_v25, %v137_v13  ;;  %v171_v34 = vstv %s385_s21  ;;  %v182_v35 = vstv %s387_s22  ;;  %s448_s9 = sld [smem:[#allocation5 + $0x8]]  ;;  %s453_s10 = sld [smem:[#allocation5 + $0x9]] }
  0x34   :  { %v108_v36 = vstv %s398_s25  ;;  %v119_v37 = vstv %s400_s26  ;;  %v151_v38 = vadd.f32 %v150_v30, %v148_v14  ;;  %v162_v39 = vadd.f32 %v161_v31, %v159_v15  ;;  %s450_s3 = sld [smem:[#allocation7]]  ;;  %s455_s11 = sld [smem:[#allocation7 + $0x1]] }
  0x35   :  { %v109_v40 = vadd.f32 %v108_v36, %v107_v28  ;;  %v120_v41 = vadd.f32 %v119_v37, %v118_v29  ;;  %v130_v42 = vstv %s406_s0  ;;  %v141_v43 = vstv %s408_s2  ;;  %s459_s12 = sld [smem:[#allocation7 + $0x2]]  ;;  %s464_s13 = sld [smem:[#allocation7 + $0x3]] }
  0x36   :  { %v131_v44 = vadd.f32 %v130_v42, %v129_v32  ;;  %v142_v45 = vadd.f32 %v141_v43, %v140_v33  ;;  %v152_v46 = vstv %s414_s1  ;;  %v163_v47 = vstv %s416_s27  ;;  %s467_s14 = sld [smem:[#allocation7 + $0x4]]  ;;  %s473_s15 = sld [smem:[#allocation7 + $0x5]] }
  0x37   :  { %262 = vtanh.f32 %v109_v40  ;;  %v153_v48 = vadd.f32 %v152_v46, %v151_v38  ;;  %v172_v49 = vmul.f32 %v392_v7, %v171_v34  ;;  %v174_v50 = vstv %s424_s29  ;;  %s480_s16 = sld [smem:[#allocation7 + $0x6]]  ;;  %s255_s19 = sld [smem:[#allocation7 + $0x7]] }
  0x38   :  { %264 = vtanh.f32 %v120_v41  ;;  %v183_v51 = vmul.f32 %v392_v7, %v182_v35  ;;  %v164_v52 = vadd.f32 %v163_v47, %v162_v39  ;;  %v191_v54 = vstv %s422_s28  ;;  %s257_s20 = sld [smem:[#allocation7 + $0x9]] }
  0x39   :  { %266 = vtanh.f32 %v131_v44  ;;  %v173_v53 = vadd.f32 %v172_v49, %v170_v18  ;;  %v185_v56 = vstv %s432_s6  ;;  %v202_v57 = vstv %s430_s30 }
  0x3a   :  { %268 = vtanh.f32 %v142_v45  ;;  %v184_v55 = vadd.f32 %v183_v51, %v181_v19  ;;  %v192_v59 = vmul.f32 %v191_v54, %v379_v0  ;;  %v193_v61 = vstv %s440_s7 }
  0x3b   :  { %270 = vtanh.f32 %v153_v48  ;;  %v175_v58 = vadd.f32 %v174_v50, %v173_v53  ;;  %v203_v62 = vmul.f32 %v202_v57, %v379_v0  ;;  %v194_v63 = vmul.f32 %v392_v7, %v193_v61 }
  0x3c   :  { %272 = vtanh.f32 %v164_v52  ;;  %v186_v60 = vadd.f32 %v185_v56, %v184_v55  ;;  %v204_v1 = vstv %s444_s8  ;;  %v111_v2 = vstv %s450_s3 }
  0x3d   :  { %274 = vtanh.f32 %v175_v58  ;;  %v196_v3 = vstv %s448_s9  ;;  %v205_v4 = vmul.f32 %v392_v7, %v204_v1  ;;  %v122_v5 = vstv %s455_s11 }
  0x3e   :  { %v195_v6 = vadd.f32 %v194_v63, %v192_v59  ;;  %v207_v8 = vstv %s453_s10  ;;  %v102_v0 = vstv %s497_s4  ;;  %v133_v10 = vstv %s459_s12  ;;  %s256_s4 = sld [smem:[#allocation7 + $0x8]] }
  0x3f   :  { %276 = vtanh.f32 %v186_v60  ;;  %v206_v11 = vadd.f32 %v205_v4, %v203_v62  ;;  %v144_v16 = vstv %s464_s13  ;;  %v155_v22 = vstv %s467_s14 }
  0x40   :  { %v197_v14 = vadd.f32 %v196_v3, %v195_v6  ;;  %v166_v26 = vstv %s473_s15  ;;  %v177_v30 = vstv %s480_s16  ;;  %v188_v34 = vstv %s255_s19 }
  0x41   :  { %v263_v9 = vpop.eup %262  ;;  %v208_v17 = vadd.f32 %v207_v8, %v206_v11  ;;  %v210_v42 = vstv %s257_s20 }
  0x42   :  { %v265_v12 = vpop.eup %264  ;;  %v112_v13 = vmul.f32 %v263_v9, %v111_v2  ;;  %278 = vtanh.f32 %v197_v14 }
  0x43   :  { %v267_v15 = vpop.eup %266  ;;  %v123_v7 = vmul.f32 %v265_v12, %v122_v5  ;;  %280 = vtanh.f32 %v208_v17 }
  0x44   :  { %v269_v18 = vpop.eup %268  ;;  %v113_v19 = vadd.f32 %v112_v13, %v102_v0  ;;  %v134_v20 = vmul.f32 %v267_v15, %v133_v10  ;;  %v199_v37 = vstv %s256_s4 }
  0x45   :  { %v271_v21 = vpop.eup %270  ;;  %v145_v24 = vmul.f32 %v269_v18, %v144_v16 }
  0x46   :  { %v124_v23 = vadd.f32 %v123_v7, %v113_v19  ;;  %v273_v25 = vpop.eup %272  ;;  %v156_v28 = vmul.f32 %v271_v21, %v155_v22 }
  0x47   :  { %v275_v29 = vpop.eup %274  ;;  %v167_v32 = vmul.f32 %v273_v25, %v166_v26 }
  0x48   :  { %v135_v27 = vadd.f32 %v134_v20, %v124_v23  ;;  %v178_v36 = vmul.f32 %v275_v29, %v177_v30 }
  0x49   :  { %v277_v33 = vpop.eup %276 }
  0x4a   :  { %v146_v31 = vadd.f32 %v145_v24, %v135_v27  ;;  %v189_v40 = vmul.f32 %v277_v33, %v188_v34 }
  0x4c   :  { %v157_v35 = vadd.f32 %v156_v28, %v146_v31  ;;  %v279_v38 = vpop.eup %278 }
  0x4d   :  { %v281_v41 = vpop.eup %280  ;;  %v200_v44 = vmul.f32 %v279_v38, %v199_v37 }
  0x4e   :  { %v168_v39 = vadd.f32 %v167_v32, %v157_v35  ;;  %v211_v46 = vmul.f32 %v281_v41, %v210_v42 }
  0x50   :  { %v179_v43 = vadd.f32 %v178_v36, %v168_v39 }
  0x52   :  { %v190_v45 = vadd.f32 %v189_v40, %v179_v43 }
  0x54   :  { %v201_v47 = vadd.f32 %v200_v44, %v190_v45 }
  0x56   :  { %v212_v48 = vadd.f32 %v211_v46, %v201_v47 }
  0x58   :  { %213 = vst [vmem:[%s498_s5] sm:$0xff] %v212_v48 }
  0x59   :  { %218 = vsyncpa [#allocation4], 1 }
  0x5a   :  { %219 = vsyncpa [#allocation6], 1 }

</bundles_post_ra>
